<compile_context>
chip_gen: v7x
topology: tpu7x:2x2x1
jax: 0.10.0
libtpu: 0.0.40
codegen_flags: <defaults>
</compile_context>

<pallas_src>
import jax
import jax.numpy as jnp
from jax.experimental import pallas as pl
from jax.experimental.pallas import tpu as pltpu
from jax.scipy.linalg import block_diag


NB_HIDDEN_1 = 20
NB_HIDDEN_2 = 10
PROBE_HIDDEN = 10
N_PROBES = 4
PROBE_OUT = 2
PROBE_HID_ALL = N_PROBES * PROBE_HIDDEN   # 40
PROBE_OUT_ALL = N_PROBES * PROBE_OUT      # 8
PROBE_NAMES = ("curvature", "loop", "vline", "hline")


# ----------------------------------------------------------------------------
# Kernels
# ----------------------------------------------------------------------------
def _main_to_h2(x, w1, b1, w2, b2):
    """h2 = fc2(relu(fc1(x))), pre-ReLU, f32 accumulation on the MXU."""
    h1 = jnp.maximum(jnp.dot(x, w1, preferred_element_type=jnp.float32) + b1, 0.0)
    h2 = jnp.dot(h1, w2, preferred_element_type=jnp.float32) + b2
    return h2


def micro_mlp_kernel(x_ref, w1_ref, b1_ref, w2_ref, b2_ref, w3_ref, b3_ref,
                     y_ref):
    """probe_mode=False variant: no probe weights, no probe output."""
    h2 = _main_to_h2(x_ref[...], w1_ref[...], b1_ref[...],
                     w2_ref[...], b2_ref[...])
    a2 = jnp.maximum(h2, 0.0)
    y_ref[...] = (jnp.dot(a2, w3_ref[...], preferred_element_type=jnp.float32)
                  + b3_ref[...]).astype(y_ref.dtype)


def micro_mlp_probe_kernel(x_ref, w1_ref, b1_ref, w2_ref, b2_ref, w3_ref, b3_ref,
                           wp1_ref, bp1_ref, wp2_ref, bp2_ref, wp3_ref, bp3_ref,
                           y_ref, probes_ref):
    """probe_mode=True variant.

    The four 3-layer probes are fused: wp1 is the (10, 40) concat of the four
    first-layer weights, wp2 is the (40, 40) block-diagonal of the four second
    layers, wp3 is the (40, 8) block-diagonal of the four heads.  This is
    numerically identical to running the probes independently.
    """
    h2 = _main_to_h2(x_ref[...], w1_ref[...], b1_ref[...],
                     w2_ref[...], b2_ref[...])

    # Fused concept probes on the pre-ReLU h2 representation.
    q1 = jnp.maximum(
        jnp.dot(h2, wp1_ref[...], preferred_element_type=jnp.float32)
        + bp1_ref[...], 0.0)
    q2 = jnp.maximum(
        jnp.dot(q1, wp2_ref[...], preferred_element_type=jnp.float32)
        + bp2_ref[...], 0.0)
    probes_ref[...] = (
        jnp.dot(q2, wp3_ref[...], preferred_element_type=jnp.float32)
        + bp3_ref[...]).astype(probes_ref.dtype)

    # Main head.
    a2 = jnp.maximum(h2, 0.0)
    y_ref[...] = (jnp.dot(a2, w3_ref[...], preferred_element_type=jnp.float32)
                  + b3_ref[...]).astype(y_ref.dtype)


# ----------------------------------------------------------------------------
# Wrapper
# ----------------------------------------------------------------------------
def _choose_batch_tile(batch, input_size, dtype_bytes=4,
                       max_tile_bytes=4 << 20, max_tb=1024):
    """Pick a batch tile: multiple of 8, <= max_tb, x-tile <= ~4 MiB."""
    tb = max_tile_bytes // max(1, input_size * dtype_bytes)
    tb = max(8, min(max_tb, (tb // 8) * 8))
    b_pad8 = ((batch + 7) // 8) * 8
    tb = min(tb, b_pad8)
    b_pad = ((batch + tb - 1) // tb) * tb
    return tb, b_pad


def _fused_probe_weights(params):
    """Concat / block-diagonalize the four probe MLPs (exact fusion)."""
    p = [params[name] for name in PROBE_NAMES]
    wp1 = jnp.concatenate([q["fc1_w"].T for q in p], axis=1)      # (10, 40)
    bp1 = jnp.concatenate([q["fc1_b"] for q in p]).reshape(1, -1)  # (1, 40)
    wp2 = block_diag(*[q["fc2_w"].T for q in p])                   # (40, 40)
    bp2 = jnp.concatenate([q["fc2_b"] for q in p]).reshape(1, -1)  # (1, 40)
    wp3 = block_diag(*[q["fc3_w"].T for q in p])                   # (40, 8)
    bp3 = jnp.concatenate([q["fc3_b"] for q in p]).reshape(1, -1)  # (1, 8)
    return wp1, bp1, wp2, bp2, wp3, bp3


def _const_spec(shape):
    # Full-array block, constant index map -> resident across grid steps.
    return pl.BlockSpec(shape, lambda i: (0,) * len(shape))


def micro_mlp_forward(x, params, probe_mode=False):
    """Pallas equivalent of MicroMLP.forward (x may have any trailing dims)."""
    B = x.shape[0]
    x2d = x.reshape(B, -1).astype(jnp.float32)           # x.view(B, -1)
    input_size = x2d.shape[1]
    output_size = params["fc3_w"].shape[0]

    # Batch tiling (pad batch so the grid divides evenly; slice results back).
    TB, B_pad = _choose_batch_tile(B, input_size)
    if B_pad != B:
        x2d = jnp.pad(x2d, ((0, B_pad - B), (0, 0)))
    grid = (B_pad // TB,)

    # Pre-transpose Linear weights to (in, out); biases -> (1, out).
    w1 = params["fc1_w"].T                                 # (in, 20)
    b1 = params["fc1_b"].reshape(1, NB_HIDDEN_1)
    w2 = params["fc2_w"].T                                 # (20, 10)
    b2 = params["fc2_b"].reshape(1, NB_HIDDEN_2)
    w3 = params["fc3_w"].T                                 # (10, out)
    b3 = params["fc3_b"].reshape(1, output_size)

    x_spec = pl.BlockSpec((TB, input_size), lambda i: (i, 0))
    y_spec = pl.BlockSpec((TB, output_size), lambda i: (i, 0))

    main_args = (x2d, w1, b1, w2, b2, w3, b3)
    main_specs = [x_spec] + [_const_spec(a.shape) for a in main_args[1:]]

    # Advisory cost estimate (whole call).
    main_flops = 2 * B_pad * (input_size * NB_HIDDEN_1
                              + NB_HIDDEN_1 * NB_HIDDEN_2
                              + NB_HIDDEN_2 * output_size)
    weight_elems = sum(int(a.size) for a in main_args[1:])
    main_bytes = 4 * (B_pad * input_size + B_pad * output_size + weight_elems)

    compiler_params = pltpu.CompilerParams(
        dimension_semantics=("parallel",))   # shards batch grid on v7x's 2 TCs

    if not probe_mode:
        y = pl.pallas_call(
            micro_mlp_kernel,
            out_shape=jax.ShapeDtypeStruct((B_pad, output_size), jnp.float32),
            grid=grid,
            in_specs=main_specs,
            out_specs=y_spec,
            compiler_params=compiler_params,
            cost_estimate=pl.CostEstimate(
                flops=main_flops, transcendentals=0,
                bytes_accessed=main_bytes),
        )(*main_args)
        return y[:B]

    # Probe-mode variant: fused probe weights, one (B, 8) probe output.
    wp1, bp1, wp2, bp2, wp3, bp3 = _fused_probe_weights(params)
    probe_args = (wp1, bp1, wp2, bp2, wp3, bp3)
    probe_specs = [_const_spec(a.shape) for a in probe_args]
    probe_spec_out = pl.BlockSpec((TB, PROBE_OUT_ALL), lambda i: (i, 0))

    probe_flops = 2 * B_pad * (NB_HIDDEN_2 * PROBE_HID_ALL
                               + PROBE_HID_ALL * PROBE_HID_ALL
                               + PROBE_HID_ALL * PROBE_OUT_ALL)
    probe_bytes = 4 * (sum(int(a.size) for a in probe_args)
                       + B_pad * PROBE_OUT_ALL)

    y, probes = pl.pallas_call(
        micro_mlp_probe_kernel,
        out_shape=(
            jax.ShapeDtypeStruct((B_pad, output_size), jnp.float32),
            jax.ShapeDtypeStruct((B_pad, PROBE_OUT_ALL), jnp.float32),
        ),
        grid=grid,
        in_specs=main_specs + probe_specs,
        out_specs=(y_spec, probe_spec_out),
        compiler_params=compiler_params,
        cost_estimate=pl.CostEstimate(
            flops=main_flops + probe_flops, transcendentals=0,
            bytes_accessed=main_bytes + probe_bytes),
    )(*main_args, *probe_args)

    y = y[:B]
    probes = probes[:B]
    curv = probes[:, 0:2]
    loop = probes[:, 2:4]
    vline = probes[:, 4:6]
    hline = probes[:, 6:8]
    return (y, curv, loop, vline, hline)


# ----------------------------------------------------------------------------
# Parameters (PyTorch-style uniform +-1/sqrt(fan_in) init) and reference
# ----------------------------------------------------------------------------
def _linear_init(key, out_dim, in_dim):
    kw, kb = jax.random.split(key)
    bound = 1.0 / jnp.sqrt(jnp.float32(in_dim))
    w = jax.random.uniform(kw, (out_dim, in_dim), jnp.float32, -bound, bound)
    b = jax.random.uniform(kb, (out_dim,), jnp.float32, -bound, bound)
    return w, b


def init_params(key, input_size, output_size):
    keys = jax.random.split(key, 3 + 3 * N_PROBES)
    params = {}
    params["fc1_w"], params["fc1_b"] = _linear_init(keys[0], NB_HIDDEN_1, input_size)
    params["fc2_w"], params["fc2_b"] = _linear_init(keys[1], NB_HIDDEN_2, NB_HIDDEN_1)
    params["fc3_w"], params["fc3_b"] = _linear_init(keys[2], output_size, NB_HIDDEN_2)
    for i, name in enumerate(PROBE_NAMES):
        k1, k2, k3 = keys[3 + 3 * i:6 + 3 * i]
        p = {}
        p["fc1_w"], p["fc1_b"] = _linear_init(k1, PROBE_HIDDEN, NB_HIDDEN_2)
        p["fc2_w"], p["fc2_b"] = _linear_init(k2, PROBE_HIDDEN, PROBE_HIDDEN)
        p["fc3_w"], p["fc3_b"] = _linear_init(k3, PROBE_OUT, PROBE_HIDDEN)
        params[name] = p
    return params


def reference_forward(x, params, probe_mode=False):
    """Pure-JAX reference mirroring the PyTorch MicroMLP.forward."""
    B = x.shape[0]
    x2d = x.reshape(B, -1).astype(jnp.float32)
    h1 = jnp.maximum(x2d @ params["fc1_w"].T + params["fc1_b"], 0.0)
    h2 = h1 @ params["fc2_w"].T + params["fc2_b"]
    concept = []
    for name in PROBE_NAMES:
        p = params[name]
        t = jnp.maximum(h2 @ p["fc1_w"].T + p["fc1_b"], 0.0)
        t = jnp.maximum(t @ p["fc2_w"].T + p["fc2_b"], 0.0)
        t = t @ p["fc3_w"].T + p["fc3_b"]
        concept.append(t)
    a2 = jnp.maximum(h2, 0.0)
    y = a2 @ params["fc3_w"].T + params["fc3_b"]
    if probe_mode:
        return (y, *concept)
    return y


# ----------------------------------------------------------------------------
# Self-test
# ----------------------------------------------------------------------------
if __name__ == "__main__":
    key = jax.random.PRNGKey(0)
    k_x, k_p = jax.random.split(key)

    # Small MNIST-like input: batch=2, 1 channel, 8x8 spatial -> input_size=64.
    B, C, H, W = 2, 1, 8, 8
    input_size = C * H * W
    output_size = 10

    x = jax.random.normal(k_x, (B, C, H, W), jnp.float32)
    params = init_params(k_p, input_size, output_size)

    # Default mode: y = fc3(relu(fc2(relu(fc1(x))))).
    y = micro_mlp_forward(x, params, probe_mode=False)
    y = jax.block_until_ready(y)

    # Probe mode: (y, curvature, loop, vline, hline).
    outs = micro_mlp_forward(x, params, probe_mode=True)
    outs = jax.block_until_ready(outs)

    # Correctness checks against the pure-JAX reference.
    y_ref = reference_forward(x, params, probe_mode=False)
    refs = reference_forward(x, params, probe_mode=True)
    assert jnp.allclose(y, y_ref, atol=1e-5, rtol=1e-5)
    for o, r in zip(outs, refs):
        assert jnp.allclose(o, r, atol=1e-5, rtol=1e-5)

    print("KERNEL_OK")
</pallas_src>

<mosaic_0001>
module attributes {stable_mosaic.version = 11 : i64} {
  func.func @micro_mlp_kernel(%arg0: i32, %arg1: memref<8x64xf32, #tpu.memory_space<vmem>>, %arg2: memref<64x20xf32, #tpu.memory_space<vmem>>, %arg3: memref<1x20xf32, #tpu.memory_space<vmem>>, %arg4: memref<20x10xf32, #tpu.memory_space<vmem>>, %arg5: memref<1x10xf32, #tpu.memory_space<vmem>>, %arg6: memref<10x10xf32, #tpu.memory_space<vmem>>, %arg7: memref<1x10xf32, #tpu.memory_space<vmem>>, %arg8: memref<8x10xf32, #tpu.memory_space<vmem>>) attributes {dimension_semantics = [#tpu.dimension_semantics<parallel>], iteration_bounds = array<i64: 1>, scalar_prefetch = 0 : i64, scratch_operands = 0 : i64, tpu.core_type = #tpu.core_type<tc>, window_params = [{transform_indices = @transform_0, window_bounds = array<i64: 8, 64>}, {pipeline_mode = #tpu.pipeline_mode<synchronous>, transform_indices = @transform_1, window_bounds = array<i64: 64, 20>}, {pipeline_mode = #tpu.pipeline_mode<synchronous>, transform_indices = @transform_2, window_bounds = array<i64: 1, 20>}, {pipeline_mode = #tpu.pipeline_mode<synchronous>, transform_indices = @transform_3, window_bounds = array<i64: 20, 10>}, {pipeline_mode = #tpu.pipeline_mode<synchronous>, transform_indices = @transform_4, window_bounds = array<i64: 1, 10>}, {pipeline_mode = #tpu.pipeline_mode<synchronous>, transform_indices = @transform_5, window_bounds = array<i64: 10, 10>}, {pipeline_mode = #tpu.pipeline_mode<synchronous>, transform_indices = @transform_6, window_bounds = array<i64: 1, 10>}, {transform_indices = @transform_7, window_bounds = array<i64: 8, 10>}]} {
    %c0 = arith.constant 0 : index
    %c0_0 = arith.constant 0 : index
    %0 = vector.load %arg1[%c0, %c0_0] : memref<8x64xf32, #tpu.memory_space<vmem>>, vector<8x64xf32>
    %c0_1 = arith.constant 0 : index
    %c0_2 = arith.constant 0 : index
    %1 = vector.load %arg2[%c0_1, %c0_2] : memref<64x20xf32, #tpu.memory_space<vmem>>, vector<64x20xf32>
    %c0_3 = arith.constant 0 : index
    %c0_4 = arith.constant 0 : index
    %2 = vector.load %arg3[%c0_3, %c0_4] : memref<1x20xf32, #tpu.memory_space<vmem>>, vector<1x20xf32>
    %c0_5 = arith.constant 0 : index
    %c0_6 = arith.constant 0 : index
    %3 = vector.load %arg4[%c0_5, %c0_6] : memref<20x10xf32, #tpu.memory_space<vmem>>, vector<20x10xf32>
    %c0_7 = arith.constant 0 : index
    %c0_8 = arith.constant 0 : index
    %4 = vector.load %arg5[%c0_7, %c0_8] : memref<1x10xf32, #tpu.memory_space<vmem>>, vector<1x10xf32>
    %cst = arith.constant dense<0.000000e+00> : vector<8x20xf32>
    %5 = tpu.matmul %0, %1, %cst {dimension_numbers = #tpu.dot_dimension_numbers<[1], [0], [0], [1], [0, 0, 1, 1], [], []>} : vector<8x64xf32>, vector<64x20xf32>, vector<8x20xf32> -> vector<8x20xf32>
    %6 = vector.broadcast %2 : vector<1x20xf32> to vector<8x20xf32>
    %7 = arith.addf %5, %6 : vector<8x20xf32>
    %cst_9 = arith.constant 0.000000e+00 : f32
    %8 = vector.broadcast %cst_9 : f32 to vector<8x20xf32>
    %9 = arith.maximumf %7, %8 : vector<8x20xf32>
    %cst_10 = arith.constant dense<0.000000e+00> : vector<8x10xf32>
    %10 = tpu.matmul %9, %3, %cst_10 {dimension_numbers = #tpu.dot_dimension_numbers<[1], [0], [0], [1], [0, 0, 1, 1], [], []>} : vector<8x20xf32>, vector<20x10xf32>, vector<8x10xf32> -> vector<8x10xf32>
    %11 = vector.broadcast %4 : vector<1x10xf32> to vector<8x10xf32>
    %12 = arith.addf %10, %11 : vector<8x10xf32>
    %cst_11 = arith.constant 0.000000e+00 : f32
    %13 = vector.broadcast %cst_11 : f32 to vector<8x10xf32>
    %14 = arith.maximumf %12, %13 : vector<8x10xf32>
    %c0_12 = arith.constant 0 : index
    %c0_13 = arith.constant 0 : index
    %15 = vector.load %arg6[%c0_12, %c0_13] : memref<10x10xf32, #tpu.memory_space<vmem>>, vector<10x10xf32>
    %cst_14 = arith.constant dense<0.000000e+00> : vector<8x10xf32>
    %16 = tpu.matmul %14, %15, %cst_14 {dimension_numbers = #tpu.dot_dimension_numbers<[1], [0], [0], [1], [0, 0, 1, 1], [], []>} : vector<8x10xf32>, vector<10x10xf32>, vector<8x10xf32> -> vector<8x10xf32>
    %c0_15 = arith.constant 0 : index
    %c0_16 = arith.constant 0 : index
    %17 = vector.load %arg7[%c0_15, %c0_16] : memref<1x10xf32, #tpu.memory_space<vmem>>, vector<1x10xf32>
    %18 = vector.broadcast %17 : vector<1x10xf32> to vector<8x10xf32>
    %19 = arith.addf %16, %18 : vector<8x10xf32>
    %c0_17 = arith.constant 0 : index
    %c0_18 = arith.constant 0 : index
    %20 = vector.load %arg8[%c0_17, %c0_18] : memref<8x10xf32, #tpu.memory_space<vmem>>, vector<8x10xf32>
    tpu.vector_store %arg8[%c0_17, %c0_18], %19 {strides = array<i32>} : memref<8x10xf32, #tpu.memory_space<vmem>>, vector<8x10xf32>,
    return
  }
  func.func @transform_0(%arg0: i32) -> (i32, i32) {
    %c0_i32 = arith.constant 0 : i32
    %c0_i32_0 = arith.constant 0 : i32
    return %arg0, %c0_i32 : i32, i32
  }
  func.func @transform_1(%arg0: i32) -> (i32, i32) {
    %c0_i32 = arith.constant 0 : i32
    %c0_i32_0 = arith.constant 0 : i32
    %c0_i32_1 = arith.constant 0 : i32
    return %c0_i32, %c0_i32_0 : i32, i32
  }
  func.func @transform_2(%arg0: i32) -> (i32, i32) {
    %c0_i32 = arith.constant 0 : i32
    %c0_i32_0 = arith.constant 0 : i32
    %c0_i32_1 = arith.constant 0 : i32
    return %c0_i32, %c0_i32_0 : i32, i32
  }
  func.func @transform_3(%arg0: i32) -> (i32, i32) {
    %c0_i32 = arith.constant 0 : i32
    %c0_i32_0 = arith.constant 0 : i32
    %c0_i32_1 = arith.constant 0 : i32
    return %c0_i32, %c0_i32_0 : i32, i32
  }
  func.func @transform_4(%arg0: i32) -> (i32, i32) {
    %c0_i32 = arith.constant 0 : i32
    %c0_i32_0 = arith.constant 0 : i32
    %c0_i32_1 = arith.constant 0 : i32
    return %c0_i32, %c0_i32_0 : i32, i32
  }
  func.func @transform_5(%arg0: i32) -> (i32, i32) {
    %c0_i32 = arith.constant 0 : i32
    %c0_i32_0 = arith.constant 0 : i32
    %c0_i32_1 = arith.constant 0 : i32
    return %c0_i32, %c0_i32_0 : i32, i32
  }
  func.func @transform_6(%arg0: i32) -> (i32, i32) {
    %c0_i32 = arith.constant 0 : i32
    %c0_i32_0 = arith.constant 0 : i32
    %c0_i32_1 = arith.constant 0 : i32
    return %c0_i32, %c0_i32_0 : i32, i32
  }
  func.func @transform_7(%arg0: i32) -> (i32, i32) {
    %c0_i32 = arith.constant 0 : i32
    %c0_i32_0 = arith.constant 0 : i32
    return %arg0, %c0_i32 : i32, i32
  }
}

</mosaic_0001>

<bundles_post_ra>
// kernel: tpu_custom_call.1
= control target key start
LH: loop header
LB: loop body
LE: loop exit
PB: predicated region body
PF: predicated region fallthrough
CT: control target
= control target key end

     0   :  { %v416_v3 = vmov 0.0|0.0   ;;  %vm417_vm0 = vmmov 0   ;;  %v418_v6 = vmov 0.0   ;;  %s527_s0 = inlined_call_operand.vmem [shape: f32[8,64], index: 0, kind: input, shape index: {}]   ;;  %s528_s1 = inlined_call_operand.vmem [shape: f32[64,20], index: 1, kind: input, shape index: {}]   ;;  %s529_s2 = inlined_call_operand.vmem [shape: f32[1,20], index: 2, kind: input, shape index: {}]   ;;  %s530_s3 = inlined_call_operand.vmem [shape: f32[20,10], index: 3, kind: input, shape index: {}]   ;;  %s531_s4 = inlined_call_operand.vmem [shape: f32[1,10], index: 4, kind: input, shape index: {}]   ;;  %s532_s5 = inlined_call_operand.vmem [shape: f32[10,10], index: 5, kind: input, shape index: {}]   ;;  %s533_s6 = inlined_call_operand.vmem [shape: f32[1,10], index: 6, kind: input, shape index: {}]   ;;  %s534_s7 = inlined_call_operand.hbm [shape: f32[8,10], index: 7, kind: output, shape index: {}]  }
   0x1   :  { %v28_v0 = vld [vmem:[%s528_s1] sm:$0xff]  ;;  %v29_v1 = vld [vmem:[%s528_s1 + $0x8] sm:$0xff]  ;;  %v30_v2 = vld [vmem:[%s528_s1 + $0x10] sm:$0xff]  ;;  %368 = vmatprep.subr.bf16.mxu0 %v416_v3  ;;  %349 = vmatprep.mubr.msk.f32.mxu0 %vm417_vm0, %v418_v6 }
   0x2   :  { %v369_v4 = vpack.c.bf16 %v29_v1, %v28_v0  ;;  %v31_v5 = vld [vmem:[%s528_s1 + $0x18] sm:$0xff]  ;;  %380 = vmatprep.subr.bf16.mxu1 %v416_v3  ;;  %358 = vmatprep.mubr.msk.f32.mxu1 %vm417_vm0, %v418_v6 }
   0x3   :  { %v372_v7 = vpack.c.bf16 %v31_v5, %v30_v2 }
   0x4   :  { %370 = vmatpush3.bf16.msra.mxu0 %v369_v4 }
   0x5   :  { %12 = vsyncpa [#allocation3], 0  ;;  %371 = vmatprep.subr.bf16.mxu0 %v416_v3  ;;  %v32_v8 = vld [vmem:[%s528_s1 + $0x20] sm:$0xff]  ;;  %v33_v9 = vld [vmem:[%s528_s1 + $0x28] sm:$0xff]  ;;  %vm47_vm1 = vcmask 523264   ;;  %vm132_vm2 = vcmask 1043456  }
   0x6   :  { %v375_v10 = vpack.c.bf16 %v33_v9, %v32_v8  ;;  %v34_v11 = vld [vmem:[%s528_s1 + $0x30] sm:$0xff]  ;;  %v35_v12 = vld [vmem:[%s528_s1 + $0x38] sm:$0xff]  ;;  %v27_v14 = vld [vmem:[%s527_s0] sm:$0xff]  ;;  %vm128_vm3 = vcmask 162816   ;;  %vm220_vm4 = vcmask 1041408   ;;  %vm419_vm5 = vmmov 1  }
   0x7   :  { %v378_v13 = vpack.c.bf16 %v35_v12, %v34_v11  ;;  %v37_v15 = vld [vmem:[%s530_s3] sm:$0xff]  ;;  %v38_v16 = vld [vmem:[%s530_s3 + $0x8] sm:$0xff]  ;;  %v39_v18 = vld [vmem:[%s530_s3 + $0x10] sm:$0xf]  ;;  %vm216_vm7 = vcmask 80896  }
   0x8   :  { %373 = vmatpush3.bf16.msra.mxu0 %v372_v7  ;;  %v381_v17 = vpack.c.bf16 %v38_v16, %v37_v15  ;;  %v309_v19 = vld [vmem:[%s529_s2] ss:$0 sm:$0xff]  ;;  %v208_v25 = vld [vmem:[%s532_s5 + $0x8] sm:$0x3]  ;;  %vm385_vm6 = vmpackc.low %vm220_vm4, %vm419_vm5 }
   0x9   :  { %374 = vmatprep.subr.bf16.mxu0 %v416_v3  ;;  %v207_v24 = vld [vmem:[%s532_s5] sm:$0xff]  ;;  %s420_s5 = smov [#allocation2]  }
   0xa   :  { %382 = vmatpush3.bf16.msra.mxu1 %v381_v17  ;;  %v384_v26 = vpack.c.bf16 %v208_v25, %v207_v24  ;;  %v311_v27 = vld [vmem:[%s531_s4] ss:$0 sm:$0xff]  ;;  %s301_s8 = sshll.u32 %s420_s5, 4  ;;  %s302_s8 = int_to_ptr.vmem [resolvable:$true] %s301_s8 }
   0xb   :  { %356 = vmatprep.subr.mxu1 %v418_v6  ;;  %v314_v32 = vld [vmem:[%s533_s6] ss:$0 sm:$0xff]  ;;  %s392_s9 = scalar_lea.vmem %s302_s8, 128  ;;  %p397_p1 = scmp.lt.s32.totalorder %s302_s8, %s302_s8 }
   0xc   :  { %376 = vmatpush3.bf16.msra.mxu0 %v375_v10  ;;  %p393_p0 = scmp.ne.s32.totalorder %s302_s8, %s392_s9  ;;  %p398_p2 = scmp.lt.s32.totalorder %s392_s9, %s392_s9 }
   0xd   :  { %377 = vmatprep.subr.bf16.mxu0 %v416_v3 }
   0xe   :  { %357 = vmatpush3.msk.msra.mxu1 %vm132_vm2, %v39_v18  ;;  %p399_p3 = por %p398_p2, %p397_p1 }
   0xf   :  { %383 = vmatprep.subr.bf16.mxu1 %v416_v3 }
  0x10   :  { %379 = vmatpush3.bf16.msra.mxu0 %v378_v13  ;;  %p400_p4 = pnand %p399_p3, %p393_p0 }
  0x13   :  { %350 = vmatmul.mubr.msk.f32.vlgmr.msra.gmra.mrb[0].mxu0 %vm47_vm1, %v27_v14 }
  0xe6   :  { %v117_v20 = vpop.f32.mrb[0].mxu0 }
  0xe7   :  { %v118_v21 = vadd.f32 %v309_v19, %v117_v20  ;;  %v351_v22 = vpop.f32.mrb[1].mxu0 }
  0xe9   :  { %v121_v23 = vmax.f32 %v118_v21, 0.0 }
  0xeb   :  { %359 = vmatmul.mubr.msk.f32.vlgmr.msra.gmra.mrb[0].mxu1 %vm128_vm3, %v121_v23 }
  0xec   :  { %365 = vmatprep.mubr.msk.f32.mxu1 %vm417_vm0, %v418_v6  ;;  %386 = vmatpush3.bf16.msk.msra.mxu1 %vm385_vm6, %v384_v26 }
 0x1be   :  { %v202_v28 = vpop.f32.mrb[0].mxu1 }
 0x1bf   :  { %v203_v29 = vadd.f32 %v311_v27, %v202_v28  ;;  %v360_v30 = vpop.f32.mrb[1].mxu1 }
 0x1c1   :  { %v206_v31 = vmax.f32 %v203_v29, 0.0 }
 0x1c3   :  { %366 = vmatmul.mubr.msk.f32.vlgmr.msra.gmra.mrb[2].mxu1 %vm216_vm7, %v206_v31 }
 0x296   :  { %v290_v33 = vpop.f32.mrb[2].mxu1 }
 0x297   :  { %v291_v34 = vadd.f32 %v314_v32, %v290_v33  ;;  %v367_v35 = vpop.f32.mrb[3].mxu1 }
 0x299   :  { %294 = vst.msk [vmem:[#allocation2] sm:$0xff] %vm216_vm7, %v291_v34 }
 0x29a   :  { %403 = shalt.err (!%p400_p4)
}
 0x29b   :  { %s404_s11 = scalar_lea.hbm %s534_s7, 128 }
 0x29c   :  { %p405_p5 = scmp.ne.s32.totalorder %s534_s7, %s404_s11  ;;  %p408_p6 = scmp.lt.u32.totalorder %s404_s11, %s534_s7 }
 0x29e   :  { %p410_p7 = pnand %p408_p6, %p405_p5 }
 0x2a0   :  { %413 = shalt.err (!%p410_p7)
}
 0x2a1   :  { %304 = dma.vmem_to_hbm [thread:$0]  %s302_s8, 128, %s534_s7, [#allocation3]  }
 0x2a2   :  { %414 = dma.done.wait [#allocation3], 128  }
 0x2a3   :  { %415 = vsyncadd [#allocation3], 4294967168 }
 0x2a4   :  { %308 = vsyncpa [#allocation3], 1 }

</bundles_post_ra>
